<compile_context>
chip_gen: v6e
topology: v6e:2x2x1
jax: 0.10.0
libtpu: 0.0.40
codegen_flags: <defaults>
</compile_context>

<pallas_src>
import functools

import numpy as np

import jax
import jax.numpy as jnp
from jax.experimental import pallas as pl
from jax.experimental.pallas import tpu as pltpu

_MXU_DTYPE = jnp.bfloat16


def _round_up(x, m):
    return (x + m - 1) // m * m


def _mxu_prefers_256_contraction():
    """True on chips with a 256-deep MXU (v6e/v7x); False (safe default) otherwise."""
    try:
        kind = jax.devices()[0].device_kind.lower()
    except Exception:
        return False
    return ("v6" in kind) or ("v7" in kind)


def _resblock_kernel(x_ref, wb_ref, bb_ref, o_ref, pad_s, *,
                     NB, H, WC, K, S, R0, M, res_scale, pack_kh_pairs):
    """One batch-tile of NB images per grid step, lane-dense (rows, W*C) layout.

    x_ref : (NB, H, WC)     f32   input images (also reused for the residual)
    wb_ref: (2, K, WC, WC)  bf16  banded weights for conv1 / conv2 (resident)
    bb_ref: (2, WC)         f32   lane-tiled biases (resident)
    o_ref : (NB, H, WC)     f32   output
    pad_s : (ROWS, WC)      bf16  scratch: image n lives at rows [R0+n*S, R0+n*S+H),
                                  every other row is a zero halo / separator.
    """
    pad = K // 2

    # Zero the whole scratch (tiny at demo size), then stage the inputs, cast to bf16 ONCE.
    # All store offsets (R0 + n*S) are multiples of 8 -> sublane-aligned packed stores.
    pad_s[...] = jnp.zeros_like(pad_s)
    for n in range(NB):
        r = R0 + n * S
        pad_s[r:r + H, :] = x_ref[n].astype(pad_s.dtype)

    def conv(idx):
        # out_pad[p] = sum_kh pad_s[p + kh] @ Wb[kh] ; valid rows for image n start at
        # p = R0 + n*S - pad.  Contraction dim = W*Cin = WC (banded weights encode kw + the
        # zero padding along W).  M covers all images at once -> one fat MXU pass per kh.
        if pack_kh_pairs and K >= 2:
            # 256-deep contraction for the first two kernel rows (v6e/v7x MXU depth).
            lhs01 = jnp.concatenate([pad_s[0:M, :], pad_s[1:1 + M, :]], axis=-1)
            w01 = wb_ref[idx, 0:2, :, :].reshape(2 * WC, WC)
            acc = jnp.dot(lhs01, w01, preferred_element_type=jnp.float32)
            start_kh = 2
        else:
            acc = jnp.dot(pad_s[0:M, :], wb_ref[idx, 0, :, :],
                          preferred_element_type=jnp.float32)
            start_kh = 1
        for kh in range(start_kh, K):
            acc = acc + jnp.dot(pad_s[kh:kh + M, :], wb_ref[idx, kh, :, :],
                                preferred_element_type=jnp.float32)
        return acc + bb_ref[idx:idx + 1, :]     # bias folded onto the accumulator

    # conv1 + bias + ReLU ; store the valid rows back into the scratch (halos stay zero).
    y = conv(0)                                  # (M, WC) f32, junk rows discarded below
    for n in range(NB):
        r = R0 + n * S
        p0 = r - pad
        pad_s[r:r + H, :] = jnp.maximum(y[p0:p0 + H, :], 0.0).astype(pad_s.dtype)

    # conv2 + bias, residual add (f32, full-lane VPU, unmasked stores).
    z = conv(1)
    for n in range(NB):
        p0 = R0 + n * S - pad
        res = z[p0:p0 + H, :]
        if res_scale != 1.0:                     # static: skipped for EDSR's res_scale=1
            res = res * res_scale
        o_ref[n] = (res + x_ref[n]).astype(o_ref.dtype)


def _banded_weights(w_hwio, W):
    """(K, K, Cin, Cout) HWIO conv weights -> (K, W*Cin, W*Cout) banded matrices.

    Wb[kh][win*Cin + ci, wo*Cout + co] = w[kh, kw, ci, co] with win = wo + kw - pad.
    Out-of-range win stays zero, which implements SAME zero-padding along W.
    """
    w = np.asarray(w_hwio, np.float32)
    K, _, Cin, Cout = w.shape
    pad = K // 2
    wb = np.zeros((K, W * Cin, W * Cout), np.float32)
    for kh in range(K):
        for wo in range(W):
            for kw in range(K):
                win = wo + kw - pad
                if 0 <= win < W:
                    wb[kh, win * Cin:(win + 1) * Cin,
                       wo * Cout:(wo + 1) * Cout] = w[kh, kw]
    return wb


def prepare_resblock_params(w1_hwio, b1, w2_hwio, b2, W):
    """One-time host-side parameter prep (outside the hot path)."""
    wb = np.stack([_banded_weights(w1_hwio, W), _banded_weights(w2_hwio, W)])
    bb = np.stack([np.tile(np.asarray(b1, np.float32), W),
                   np.tile(np.asarray(b2, np.float32), W)])
    return jnp.asarray(wb, _MXU_DTYPE), jnp.asarray(bb, jnp.float32)


@functools.partial(jax.jit,
                   static_argnames=("res_scale", "images_per_step", "pack_kh_pairs"))
def resblock_pallas_nhwc(x_nhwc, wb, bb, *, res_scale=1.0, images_per_step=None,
                         pack_kh_pairs=False):
    """x_nhwc: (N, H, W, C) f32; wb/bb from prepare_resblock_params."""
    N, H, W, C = x_nhwc.shape
    K = wb.shape[1]
    WC = W * C
    assert wb.shape == (2, K, WC, WC) and bb.shape == (2, WC)

    # One fat step for the whole batch by default: halves fixed per-step overhead on the
    # single-TC chips and gives the MXU an M of ~N*(H+8) rows instead of H.
    NB = N if images_per_step is None else int(images_per_step)
    assert N % NB == 0, (N, NB)
    pad = K // 2
    R0 = 8                                   # leading zero rows (top halo), 8-aligned
    S = _round_up(H + 2 * pad, 8)            # per-image row stride (>= 2*pad zero gap)
    M = _round_up(R0 + (NB - 1) * S + H - pad, 8)   # matmul M (a few junk rows included)
    ROWS = _round_up(M + K - 1, 8)           # scratch rows actually read

    x2 = x_nhwc.reshape(N, H, WC)            # minor-dim merge: layout-preserving (free)
    kernel = functools.partial(
        _resblock_kernel, NB=NB, H=H, WC=WC, K=K, S=S, R0=R0, M=M,
        res_scale=float(res_scale), pack_kh_pairs=bool(pack_kh_pairs))

    out2 = pl.pallas_call(
        kernel,
        out_shape=jax.ShapeDtypeStruct((N, H, WC), x_nhwc.dtype),
        grid_spec=pltpu.PrefetchScalarGridSpec(
            num_scalar_prefetch=0,
            grid=(N // NB,),
            in_specs=[
                pl.BlockSpec((NB, H, WC), lambda g: (g, 0, 0)),
                pl.BlockSpec((2, K, WC, WC), lambda g: (0, 0, 0, 0)),  # resident
                pl.BlockSpec((2, WC), lambda g: (0, 0)),               # resident
            ],
            out_specs=pl.BlockSpec((NB, H, WC), lambda g: (g, 0, 0)),
            scratch_shapes=[pltpu.VMEM((ROWS, WC), _MXU_DTYPE)],
        ),
        compiler_params=pltpu.CompilerParams(
            dimension_semantics=("parallel",)),
    )(x2, wb, bb)
    return out2.reshape(N, H, W, C)


def resblock_reference_nhwc(x, w1_hwio, b1, w2_hwio, b2, res_scale=1.0):
    """Pure-JAX reference matching torch.nn.Conv2d(padding=k//2) semantics (NHWC/HWIO)."""
    dn = jax.lax.conv_dimension_numbers(x.shape, w1_hwio.shape,
                                        ('NHWC', 'HWIO', 'NHWC'))
    y = jax.lax.conv_general_dilated(x, w1_hwio, (1, 1), 'SAME',
                                     dimension_numbers=dn,
                                     precision=jax.lax.Precision.HIGHEST)
    y = jnp.maximum(y + b1.reshape(1, 1, 1, -1), 0.0)
    y = jax.lax.conv_general_dilated(y, w2_hwio, (1, 1), 'SAME',
                                     dimension_numbers=dn,
                                     precision=jax.lax.Precision.HIGHEST)
    y = y + b2.reshape(1, 1, 1, -1)
    return y * res_scale + x


if __name__ == "__main__":
    # ResBlock(conv, n_feat=8, kernel_size=3, bias=True, bn=False, act=ReLU, res_scale=1)
    # W * C = 16 * 8 = 128 -> the lane-dense layout fills exactly one full lane tile.
    N, C, H, W, K = 2, 8, 16, 16, 3
    res_scale = 1.0

    key = jax.random.PRNGKey(0)
    kx, kw1, kb1, kw2, kb2 = jax.random.split(key, 5)
    x = jax.random.normal(kx, (N, H, W, C), jnp.float32)           # NHWC activations
    w1 = jax.random.normal(kw1, (K, K, C, C), jnp.float32) * 0.1   # HWIO weights
    b1 = jax.random.normal(kb1, (C,), jnp.float32) * 0.1
    w2 = jax.random.normal(kw2, (K, K, C, C), jnp.float32) * 0.1
    b2 = jax.random.normal(kb2, (C,), jnp.float32) * 0.1

    wb, bb = prepare_resblock_params(w1, b1, w2, b2, W)            # one-time host prep
    pack = _mxu_prefers_256_contraction()                          # 256-deep on v6e/v7x only
    out = resblock_pallas_nhwc(x, wb, bb, res_scale=res_scale, pack_kh_pairs=pack)
    out = jax.block_until_ready(out)

    ref = resblock_reference_nhwc(x, w1, b1, w2, b2, res_scale)
    assert out.shape == (N, H, W, C), out.shape
    # bf16 MXU operands with f32 accumulation -> bf16-level tolerance vs. the f32 reference.
    assert jnp.allclose(out, ref, atol=5e-2, rtol=5e-2), (
        float(jnp.max(jnp.abs(out - ref))))

    print("KERNEL_OK")
</pallas_src>

<mosaic_0001>
module attributes {stable_mosaic.version = 11 : i64} {
  func.func @_resblock_kernel(%arg0: i32, %arg1: memref<2x16x128xf32, #tpu.memory_space<vmem>>, %arg2: memref<2x3x128x128xbf16, #tpu.memory_space<vmem>>, %arg3: memref<2x128xf32, #tpu.memory_space<vmem>>, %arg4: memref<2x16x128xf32, #tpu.memory_space<vmem>>, %arg5: memref<56x128xbf16, #tpu.memory_space<vmem>>) attributes {dimension_semantics = [#tpu.dimension_semantics<parallel>], iteration_bounds = array<i64: 1>, scalar_prefetch = 0 : i64, scratch_operands = 1 : i64, tpu.core_type = #tpu.core_type<tc>, window_params = [{transform_indices = @transform_0, window_bounds = array<i64: 2, 16, 128>}, {pipeline_mode = #tpu.pipeline_mode<synchronous>, transform_indices = @transform_1, window_bounds = array<i64: 2, 3, 128, 128>}, {pipeline_mode = #tpu.pipeline_mode<synchronous>, transform_indices = @transform_2, window_bounds = array<i64: 2, 128>}, {transform_indices = @transform_3, window_bounds = array<i64: 2, 16, 128>}]} {
    %cst = arith.constant 0.000000e+00 : bf16
    %0 = vector.broadcast %cst : bf16 to vector<56x128xbf16>
    %c0 = arith.constant 0 : index
    %c0_0 = arith.constant 0 : index
    %1 = vector.load %arg5[%c0, %c0_0] : memref<56x128xbf16, #tpu.memory_space<vmem>>, vector<56x128xbf16>
    tpu.vector_store %arg5[%c0, %c0_0], %0 {strides = array<i32>} : memref<56x128xbf16, #tpu.memory_space<vmem>>, vector<56x128xbf16>,
    %c0_1 = arith.constant 0 : index
    %c0_2 = arith.constant 0 : index
    %c0_3 = arith.constant 0 : index
    %2 = vector.load %arg1[%c0_1, %c0_2, %c0_3] : memref<2x16x128xf32, #tpu.memory_space<vmem>>, vector<1x16x128xf32>
    %3 = vector.shape_cast %2 : vector<1x16x128xf32> to vector<16x128xf32>
    %4 = arith.truncf %3 : vector<16x128xf32> to vector<16x128xbf16>
    %c8 = arith.constant 8 : index
    %c0_4 = arith.constant 0 : index
    %5 = vector.load %arg5[%c8, %c0_4] : memref<56x128xbf16, #tpu.memory_space<vmem>>, vector<16x128xbf16>
    tpu.vector_store %arg5[%c8, %c0_4], %4 {strides = array<i32>} : memref<56x128xbf16, #tpu.memory_space<vmem>>, vector<16x128xbf16>,
    %c1 = arith.constant 1 : index
    %c0_5 = arith.constant 0 : index
    %c0_6 = arith.constant 0 : index
    %6 = vector.load %arg1[%c1, %c0_5, %c0_6] : memref<2x16x128xf32, #tpu.memory_space<vmem>>, vector<1x16x128xf32>
    %7 = vector.shape_cast %6 : vector<1x16x128xf32> to vector<16x128xf32>
    %8 = arith.truncf %7 : vector<16x128xf32> to vector<16x128xbf16>
    %c32 = arith.constant 32 : index
    %c0_7 = arith.constant 0 : index
    %9 = vector.load %arg5[%c32, %c0_7] : memref<56x128xbf16, #tpu.memory_space<vmem>>, vector<16x128xbf16>
    tpu.vector_store %arg5[%c32, %c0_7], %8 {strides = array<i32>} : memref<56x128xbf16, #tpu.memory_space<vmem>>, vector<16x128xbf16>,
    %c0_8 = arith.constant 0 : index
    %c0_9 = arith.constant 0 : index
    %10 = vector.load %arg5[%c0_8, %c0_9] : memref<56x128xbf16, #tpu.memory_space<vmem>>, vector<48x128xbf16>
    %c0_10 = arith.constant 0 : index
    %c0_11 = arith.constant 0 : index
    %c0_12 = arith.constant 0 : index
    %c0_13 = arith.constant 0 : index
    %11 = vector.load %arg2[%c0_10, %c0_11, %c0_12, %c0_13] : memref<2x3x128x128xbf16, #tpu.memory_space<vmem>>, vector<1x1x128x128xbf16>
    %12 = vector.shape_cast %11 : vector<1x1x128x128xbf16> to vector<128x128xbf16>
    %cst_14 = arith.constant dense<0.000000e+00> : vector<48x128xf32>
    %13 = tpu.matmul %10, %12, %cst_14 {dimension_numbers = #tpu.dot_dimension_numbers<[1], [0], [0], [1], [0, 0, 1, 1], [], []>} : vector<48x128xbf16>, vector<128x128xbf16>, vector<48x128xf32> -> vector<48x128xf32>
    %c1_15 = arith.constant 1 : index
    %c0_16 = arith.constant 0 : index
    %14 = vector.load %arg5[%c1_15, %c0_16] : memref<56x128xbf16, #tpu.memory_space<vmem>>, vector<48x128xbf16>
    %c0_17 = arith.constant 0 : index
    %c1_18 = arith.constant 1 : index
    %c0_19 = arith.constant 0 : index
    %c0_20 = arith.constant 0 : index
    %15 = vector.load %arg2[%c0_17, %c1_18, %c0_19, %c0_20] : memref<2x3x128x128xbf16, #tpu.memory_space<vmem>>, vector<1x1x128x128xbf16>
    %16 = vector.shape_cast %15 : vector<1x1x128x128xbf16> to vector<128x128xbf16>
    %cst_21 = arith.constant dense<0.000000e+00> : vector<48x128xf32>
    %17 = tpu.matmul %14, %16, %cst_21 {dimension_numbers = #tpu.dot_dimension_numbers<[1], [0], [0], [1], [0, 0, 1, 1], [], []>} : vector<48x128xbf16>, vector<128x128xbf16>, vector<48x128xf32> -> vector<48x128xf32>
    %18 = arith.addf %13, %17 : vector<48x128xf32>
    %c2 = arith.constant 2 : index
    %c0_22 = arith.constant 0 : index
    %19 = vector.load %arg5[%c2, %c0_22] : memref<56x128xbf16, #tpu.memory_space<vmem>>, vector<48x128xbf16>
    %c0_23 = arith.constant 0 : index
    %c2_24 = arith.constant 2 : index
    %c0_25 = arith.constant 0 : index
    %c0_26 = arith.constant 0 : index
    %20 = vector.load %arg2[%c0_23, %c2_24, %c0_25, %c0_26] : memref<2x3x128x128xbf16, #tpu.memory_space<vmem>>, vector<1x1x128x128xbf16>
    %21 = vector.shape_cast %20 : vector<1x1x128x128xbf16> to vector<128x128xbf16>
    %cst_27 = arith.constant dense<0.000000e+00> : vector<48x128xf32>
    %22 = tpu.matmul %19, %21, %cst_27 {dimension_numbers = #tpu.dot_dimension_numbers<[1], [0], [0], [1], [0, 0, 1, 1], [], []>} : vector<48x128xbf16>, vector<128x128xbf16>, vector<48x128xf32> -> vector<48x128xf32>
    %23 = arith.addf %18, %22 : vector<48x128xf32>
    %c0_28 = arith.constant 0 : index
    %c0_29 = arith.constant 0 : index
    %24 = vector.load %arg3[%c0_28, %c0_29] : memref<2x128xf32, #tpu.memory_space<vmem>>, vector<1x128xf32>
    %25 = vector.broadcast %24 : vector<1x128xf32> to vector<48x128xf32>
    %26 = arith.addf %23, %25 : vector<48x128xf32>
    %27 = vector.extract_strided_slice %26 {offsets = [7, 0], sizes = [16, 128], strides = [1, 1]} : vector<48x128xf32> to vector<16x128xf32>
    %cst_30 = arith.constant 0.000000e+00 : f32
    %28 = vector.broadcast %cst_30 : f32 to vector<16x128xf32>
    %29 = arith.maximumf %27, %28 : vector<16x128xf32>
    %30 = arith.truncf %29 : vector<16x128xf32> to vector<16x128xbf16>
    %c8_31 = arith.constant 8 : index
    %c0_32 = arith.constant 0 : index
    %31 = vector.load %arg5[%c8_31, %c0_32] : memref<56x128xbf16, #tpu.memory_space<vmem>>, vector<16x128xbf16>
    tpu.vector_store %arg5[%c8_31, %c0_32], %30 {strides = array<i32>} : memref<56x128xbf16, #tpu.memory_space<vmem>>, vector<16x128xbf16>,
    %32 = vector.extract_strided_slice %26 {offsets = [31, 0], sizes = [16, 128], strides = [1, 1]} : vector<48x128xf32> to vector<16x128xf32>
    %cst_33 = arith.constant 0.000000e+00 : f32
    %33 = vector.broadcast %cst_33 : f32 to vector<16x128xf32>
    %34 = arith.maximumf %32, %33 : vector<16x128xf32>
    %35 = arith.truncf %34 : vector<16x128xf32> to vector<16x128xbf16>
    %c32_34 = arith.constant 32 : index
    %c0_35 = arith.constant 0 : index
    %36 = vector.load %arg5[%c32_34, %c0_35] : memref<56x128xbf16, #tpu.memory_space<vmem>>, vector<16x128xbf16>
    tpu.vector_store %arg5[%c32_34, %c0_35], %35 {strides = array<i32>} : memref<56x128xbf16, #tpu.memory_space<vmem>>, vector<16x128xbf16>,
    %c0_36 = arith.constant 0 : index
    %c0_37 = arith.constant 0 : index
    %37 = vector.load %arg5[%c0_36, %c0_37] : memref<56x128xbf16, #tpu.memory_space<vmem>>, vector<48x128xbf16>
    %c1_38 = arith.constant 1 : index
    %c0_39 = arith.constant 0 : index
    %c0_40 = arith.constant 0 : index
    %c0_41 = arith.constant 0 : index
    %38 = vector.load %arg2[%c1_38, %c0_39, %c0_40, %c0_41] : memref<2x3x128x128xbf16, #tpu.memory_space<vmem>>, vector<1x1x128x128xbf16>
    %39 = vector.shape_cast %38 : vector<1x1x128x128xbf16> to vector<128x128xbf16>
    %cst_42 = arith.constant dense<0.000000e+00> : vector<48x128xf32>
    %40 = tpu.matmul %37, %39, %cst_42 {dimension_numbers = #tpu.dot_dimension_numbers<[1], [0], [0], [1], [0, 0, 1, 1], [], []>} : vector<48x128xbf16>, vector<128x128xbf16>, vector<48x128xf32> -> vector<48x128xf32>
    %c1_43 = arith.constant 1 : index
    %c0_44 = arith.constant 0 : index
    %41 = vector.load %arg5[%c1_43, %c0_44] : memref<56x128xbf16, #tpu.memory_space<vmem>>, vector<48x128xbf16>
    %c1_45 = arith.constant 1 : index
    %c1_46 = arith.constant 1 : index
    %c0_47 = arith.constant 0 : index
    %c0_48 = arith.constant 0 : index
    %42 = vector.load %arg2[%c1_45, %c1_46, %c0_47, %c0_48] : memref<2x3x128x128xbf16, #tpu.memory_space<vmem>>, vector<1x1x128x128xbf16>
    %43 = vector.shape_cast %42 : vector<1x1x128x128xbf16> to vector<128x128xbf16>
    %cst_49 = arith.constant dense<0.000000e+00> : vector<48x128xf32>
    %44 = tpu.matmul %41, %43, %cst_49 {dimension_numbers = #tpu.dot_dimension_numbers<[1], [0], [0], [1], [0, 0, 1, 1], [], []>} : vector<48x128xbf16>, vector<128x128xbf16>, vector<48x128xf32> -> vector<48x128xf32>
    %45 = arith.addf %40, %44 : vector<48x128xf32>
    %c2_50 = arith.constant 2 : index
    %c0_51 = arith.constant 0 : index
    %46 = vector.load %arg5[%c2_50, %c0_51] : memref<56x128xbf16, #tpu.memory_space<vmem>>, vector<48x128xbf16>
    %c1_52 = arith.constant 1 : index
    %c2_53 = arith.constant 2 : index
    %c0_54 = arith.constant 0 : index
    %c0_55 = arith.constant 0 : index
    %47 = vector.load %arg2[%c1_52, %c2_53, %c0_54, %c0_55] : memref<2x3x128x128xbf16, #tpu.memory_space<vmem>>, vector<1x1x128x128xbf16>
    %48 = vector.shape_cast %47 : vector<1x1x128x128xbf16> to vector<128x128xbf16>
    %cst_56 = arith.constant dense<0.000000e+00> : vector<48x128xf32>
    %49 = tpu.matmul %46, %48, %cst_56 {dimension_numbers = #tpu.dot_dimension_numbers<[1], [0], [0], [1], [0, 0, 1, 1], [], []>} : vector<48x128xbf16>, vector<128x128xbf16>, vector<48x128xf32> -> vector<48x128xf32>
    %50 = arith.addf %45, %49 : vector<48x128xf32>
    %c1_57 = arith.constant 1 : index
    %c0_58 = arith.constant 0 : index
    %51 = vector.load %arg3[%c1_57, %c0_58] : memref<2x128xf32, #tpu.memory_space<vmem>>, vector<1x128xf32>
    %52 = vector.broadcast %51 : vector<1x128xf32> to vector<48x128xf32>
    %53 = arith.addf %50, %52 : vector<48x128xf32>
    %54 = vector.extract_strided_slice %53 {offsets = [7, 0], sizes = [16, 128], strides = [1, 1]} : vector<48x128xf32> to vector<16x128xf32>
    %c0_59 = arith.constant 0 : index
    %c0_60 = arith.constant 0 : index
    %c0_61 = arith.constant 0 : index
    %55 = vector.load %arg1[%c0_59, %c0_60, %c0_61] : memref<2x16x128xf32, #tpu.memory_space<vmem>>, vector<1x16x128xf32>
    %56 = vector.shape_cast %55 : vector<1x16x128xf32> to vector<16x128xf32>
    %57 = arith.addf %54, %56 : vector<16x128xf32>
    %c0_62 = arith.constant 0 : index
    %c0_63 = arith.constant 0 : index
    %c0_64 = arith.constant 0 : index
    %58 = vector.load %arg4[%c0_62, %c0_63, %c0_64] : memref<2x16x128xf32, #tpu.memory_space<vmem>>, vector<1x16x128xf32>
    %59 = vector.shape_cast %58 : vector<1x16x128xf32> to vector<16x128xf32>
    %60 = vector.shape_cast %57 : vector<16x128xf32> to vector<1x16x128xf32>
    tpu.vector_store %arg4[%c0_62, %c0_63, %c0_64], %60 {strides = array<i32>} : memref<2x16x128xf32, #tpu.memory_space<vmem>>, vector<1x16x128xf32>,
    %61 = vector.extract_strided_slice %53 {offsets = [31, 0], sizes = [16, 128], strides = [1, 1]} : vector<48x128xf32> to vector<16x128xf32>
    %c1_65 = arith.constant 1 : index
    %c0_66 = arith.constant 0 : index
    %c0_67 = arith.constant 0 : index
    %62 = vector.load %arg1[%c1_65, %c0_66, %c0_67] : memref<2x16x128xf32, #tpu.memory_space<vmem>>, vector<1x16x128xf32>
    %63 = vector.shape_cast %62 : vector<1x16x128xf32> to vector<16x128xf32>
    %64 = arith.addf %61, %63 : vector<16x128xf32>
    %c1_68 = arith.constant 1 : index
    %c0_69 = arith.constant 0 : index
    %c0_70 = arith.constant 0 : index
    %65 = vector.load %arg4[%c1_68, %c0_69, %c0_70] : memref<2x16x128xf32, #tpu.memory_space<vmem>>, vector<1x16x128xf32>
    %66 = vector.shape_cast %65 : vector<1x16x128xf32> to vector<16x128xf32>
    %67 = vector.shape_cast %64 : vector<16x128xf32> to vector<1x16x128xf32>
    tpu.vector_store %arg4[%c1_68, %c0_69, %c0_70], %67 {strides = array<i32>} : memref<2x16x128xf32, #tpu.memory_space<vmem>>, vector<1x16x128xf32>,
    return
  }
  func.func @transform_0(%arg0: i32) -> (i32, i32, i32) {
    %c0_i32 = arith.constant 0 : i32
    %c0_i32_0 = arith.constant 0 : i32
    %c0_i32_1 = arith.constant 0 : i32
    return %arg0, %c0_i32, %c0_i32_0 : i32, i32, i32
  }
  func.func @transform_1(%arg0: i32) -> (i32, i32, i32, i32) {
    %c0_i32 = arith.constant 0 : i32
    %c0_i32_0 = arith.constant 0 : i32
    %c0_i32_1 = arith.constant 0 : i32
    %c0_i32_2 = arith.constant 0 : i32
    %c0_i32_3 = arith.constant 0 : i32
    return %c0_i32, %c0_i32_0, %c0_i32_1, %c0_i32_2 : i32, i32, i32, i32
  }
  func.func @transform_2(%arg0: i32) -> (i32, i32) {
    %c0_i32 = arith.constant 0 : i32
    %c0_i32_0 = arith.constant 0 : i32
    %c0_i32_1 = arith.constant 0 : i32
    return %c0_i32, %c0_i32_0 : i32, i32
  }
  func.func @transform_3(%arg0: i32) -> (i32, i32, i32) {
    %c0_i32 = arith.constant 0 : i32
    %c0_i32_0 = arith.constant 0 : i32
    %c0_i32_1 = arith.constant 0 : i32
    return %arg0, %c0_i32, %c0_i32_0 : i32, i32, i32
  }
}

</mosaic_0001>

<bundles_post_ra>
// kernel: resblock_pallas_nhwc.1
= control target key start
LH: loop header
LB: loop body
LE: loop exit
PB: predicated region body
PF: predicated region fallthrough
CT: control target
= control target key end

     0   :  { %v1603_v0 = vmov 0.0   ;;  %v1604_v2 = vmov 0   ;;  %vm1605_vm0 = vmmov 0   ;;  %vm111_vm1 = vsmask.f32 7424  ;;  %s1961_s1 = inlined_call_operand.vmem [shape: bf16[2,3,128,128], index: 1, kind: input, shape index: {}]   ;;  %s1962_s0 = inlined_call_operand.vmem [shape: f32[2,16,128], index: 0, kind: input, shape index: {}]   ;;  %s1963_s2 = inlined_call_operand.vmem [shape: f32[2,128], index: 2, kind: input, shape index: {}]   ;;  %s1964_s3 = inlined_call_operand.vmem [shape: f32[2,16,128], index: 3, kind: output, shape index: {}]  }
   0x1   :  { %1368 = vmatprep.subr.bf16.mxu0 %v1603_v0  ;;  %1396 = vmatprep.subr.bf16.mxu1 %v1603_v0  ;;  %v1539_v1 = vld [vmem:[%s1961_s1 + $0x78] sm:$0xff]   ;;  %15 = vst [vmem:[#allocation2] sm:$0xf] %v1604_v2  ;;  %16 = vst [vmem:[#allocation2 + $0x4] sm:$0xf] %v1604_v2  ;;  %v1541_v4 = vld [vmem:[%s1961_s1 + $0x70] sm:$0xff]  }
   0x2   :  { %17 = vst [vmem:[#allocation2 + $0x8] sm:$0xf] %v1604_v2  ;;  %18 = vst [vmem:[#allocation2 + $0xc] sm:$0xf] %v1604_v2  ;;  %v1540_v3 = vld [vmem:[%s1961_s1 + $0x38] sm:$0xff]   ;;  %1384 = vmatprep.mubr.msk.bf16.mxu0 %vm1605_vm0, %v1603_v0  ;;  %1412 = vmatprep.mubr.msk.bf16.mxu1 %vm1605_vm0, %v1603_v0  ;;  %v1542_v5 = vld [vmem:[%s1961_s1 + $0x30] sm:$0xff]  }
   0x3   :  { %19 = vst [vmem:[#allocation2 + $0x10] sm:$0xf] %v1604_v2  ;;  %20 = vst [vmem:[#allocation2 + $0x14] sm:$0xf] %v1604_v2  ;;  %1369 = vmatpush3.bf16.msra.mxu0 %v1539_v1  ;;  %1397 = vmatpush3.bf16.msra.mxu1 %v1540_v3  ;;  %v1543_v6 = vld [vmem:[%s1961_s1 + $0x68] sm:$0xff]   ;;  %v1545_v8 = vld [vmem:[%s1961_s1 + $0x60] sm:$0xff]  }
   0x4   :  { %21 = vst [vmem:[#allocation2 + $0x18] sm:$0xf] %v1604_v2  ;;  %1370 = vmatprep.subr.bf16.mxu0 %v1603_v0  ;;  %1398 = vmatprep.subr.bf16.mxu1 %v1603_v0  ;;  %v1544_v7 = vld [vmem:[%s1961_s1 + $0x28] sm:$0xff]   ;;  %v1546_v9 = vld [vmem:[%s1961_s1 + $0x20] sm:$0xff]   ;;  %v1547_v10 = vld [vmem:[%s1961_s1 + $0x58] sm:$0xff]   ;;  %vm392_vm2 = vcmask 1046528  }
   0x5   :  { %v1548_v11 = vld [vmem:[%s1961_s1 + $0x18] sm:$0xff]   ;;  %v1673_v12 = vld [vmem:[%s1962_s0] sm:$0xff]  ;;  %v1678_v13 = vld [vmem:[%s1962_s0 + $0x8] sm:$0xff]  ;;  %vm538_vm3 = vsmask.f32 256 }
   0x6   :  { %v1286_v14 = vpack.c.bf16 %v1673_v12, %v1673_v12  ;;  %v1287_v15 = vpack.c.bf16 %v1678_v13, %v1678_v13  ;;  %v1549_v16 = vld [vmem:[%s1961_s1 + $0x50] sm:$0xff]   ;;  %v1551_v18 = vld [vmem:[%s1961_s1 + $0x48] sm:$0xff]   ;;  %v1703_v20 = vld [vmem:[%s1962_s0 + $0x18] sm:$0xff]  ;;  %vm539_vm4 = vsmask.f32 4368 }
   0x7   :  { %1371 = vmatpush3.bf16.msra.mxu0 %v1541_v4  ;;  %1399 = vmatpush3.bf16.msra.mxu1 %v1542_v5  ;;  %v1550_v17 = vld [vmem:[%s1961_s1 + $0x10] sm:$0xff]   ;;  %v1552_v21 = vld [vmem:[%s1961_s1 + $0x8] sm:$0xff]   ;;  %v1553_v24 = vld [vmem:[%s1961_s1 + $0x40] sm:$0xff]  }
   0x8   :  { %1372 = vmatprep.subr.bf16.mxu0 %v1603_v0  ;;  %1400 = vmatprep.subr.bf16.mxu1 %v1603_v0  ;;  %32 = vst [vmem:[#allocation2 + $0x4] sm:$0xf] %v1286_v14  ;;  %33 = vst [vmem:[#allocation2 + $0x8] sm:$0xf] %v1287_v15  ;;  %v1698_v19 = vld [vmem:[%s1962_s0 + $0x10] sm:$0xff]  ;;  %v1554_v28 = vld [vmem:[%s1961_s1] sm:$0xff]  }
   0x9   :  { %v1299_v22 = vpack.c.bf16 %v1703_v20, %v1698_v19  ;;  %v69_v23 = vld [vmem:[#allocation2] sm:$0xf]  ;;  %v1558_v39 = vld [vmem:[%s1961_s1 + $0xb8] sm:$0xff]   ;;  %v1559_v44 = vld [vmem:[%s1961_s1 + $0xb0] sm:$0xff]  }
   0xa   :  { %v1560_v49 = vld [vmem:[%s1961_s1 + $0xa8] sm:$0xff]   ;;  %v1563_v51 = vld [vmem:[%s1961_s1 + $0xa0] sm:$0xff]   ;;  %v1564_v54 = vld [vmem:[%s1961_s1 + $0x98] sm:$0xff]  }
   0xb   :  { %1373 = vmatpush3.bf16.msra.mxu0 %v1543_v6  ;;  %1401 = vmatpush3.bf16.msra.mxu1 %v1544_v7  ;;  %1301 = vst [vmem:[#allocation2 + $0x10] sm:$0xff] %v1299_v22   ;;  %v1715_v25 = vld [vmem:[#allocation2 + $0x18] ss:$0 sps:$4 sm:$0x11]   ;;  %v1567_v56 = vld [vmem:[%s1961_s1 + $0x90] sm:$0xff]   ;;  %v1568_v58 = vld [vmem:[%s1961_s1 + $0x88] sm:$0xff]  }
   0xc   :  { %1374 = vmatprep.subr.bf16.mxu0 %v1603_v0  ;;  %1402 = vmatprep.subr.bf16.mxu1 %v1603_v0  ;;  %v136_v35 = vshll.u32 %v1715_v25, 16  ;;  %v371_v57 = vld [vmem:[#allocation2] sm:$0xe]  ;;  %v398_v3 = vrot.slane %v1715_v25, 1  ;;  %v1571_v5 = vld [vmem:[%s1961_s1 + $0xf8] sm:$0xff]   ;;  %v1572_v6 = vld [vmem:[%s1961_s1 + $0xf0] sm:$0xff]  }
   0xd   :  { %v1569_v60 = vld [vmem:[%s1961_s1 + $0x80] sm:$0xff]   ;;  %v1573_v7 = vld [vmem:[%s1961_s1 + $0x138] sm:$0xff]   ;;  %vm1862_vm5 = vmor %vm538_vm3, %vm539_vm4 }
   0xe   :  { %v138_v42 = vrot.slane %v136_v35, 1  ;;  %v1578_v14 = vld [vmem:[%s1961_s1 + $0xd8] sm:$0xff]   ;;  %v1579_v15 = vld [vmem:[%s1961_s1 + $0x120] sm:$0xff]  }
   0xf   :  { %1375 = vmatpush3.bf16.msra.mxu0 %v1545_v8  ;;  %1403 = vmatpush3.bf16.msra.mxu1 %v1546_v9  ;;  %v1717_v26 = vld [vmem:[#allocation2 + $0x4] sm:$0xf]  ;;  %v1719_v27 = vld [vmem:[#allocation2 + $0x8] sm:$0xff]   ;;  %v1575_v9 = vld [vmem:[%s1961_s1 + $0x130] sm:$0xff]  }
  0x10   :  { %1376 = vmatprep.subr.bf16.mxu0 %v1603_v0  ;;  %1404 = vmatprep.subr.bf16.mxu1 %v1603_v0  ;;  %v1143_v29 = vcombine.low %v69_v23, %v1717_v26  ;;  %v120_v30 = vshll.u32 %v1719_v27, 16  ;;  %v1557_v34 = vld [vmem:[#allocation2] sm:$0xff]   ;;  %v124_v40 = vshrl.u32 %v1719_v27, 16  ;;  %v1562_v47 = vld [vmem:[#allocation2 + $0x8] sm:$0xff]   ;;  %v1182_v59 = vcombine.low %v371_v57, %v1717_v26 }
  0x11   :  { %v394_v62 = vrot.slane %v1719_v27, 1  ;;  %v1574_v8 = vld [vmem:[%s1961_s1 + $0xe8] sm:$0xff]   ;;  %v1584_v22 = vld [vmem:[%s1961_s1 + $0xc0] sm:$0xff]  }
  0x12   :  { %v113_v31 = vshrl.u32 %v1143_v29, 16  ;;  %v115_v32 = vshll.u32 %v1143_v29, 16  ;;  %v122_v33 = vrot.slane %v120_v30, 1  ;;  %v1730_v37 = vld [vmem:[#allocation2 + $0x10] sm:$0xff]   ;;  %v393_v61 = vrot.slane %v1182_v59, 1  ;;  %v1586_v23 = vld [vmem:[%s1961_s1 + $0x108] sm:$0xff]  }
  0x13   :  { %1377 = vmatpush3.bf16.msra.mxu0 %v1547_v10  ;;  %1405 = vmatpush3.bf16.msra.mxu1 %v1548_v11  ;;  %v128_v41 = vshll.u32 %v1730_v37, 16  ;;  %v132_v46 = vshrl.u32 %v1730_v37, 16  ;;  %v1566_v52 = vld [vmem:[#allocation2 + $0x10] sm:$0xff]   ;;  %v396_v1 = vrot.slane %v1730_v37, 1  ;;  %v1576_v10 = vld [vmem:[%s1961_s1 + $0xe0] sm:$0xff]   ;;  %v1577_v11 = vld [vmem:[%s1961_s1 + $0x128] sm:$0xff]  }
  0x14   :  { %1378 = vmatprep.subr.bf16.mxu0 %v1603_v0  ;;  %1406 = vmatprep.subr.bf16.mxu1 %v1603_v0  ;;  %v117_v36 = vrot.slane %v115_v32, 1  ;;  %v126_v48 = vor.u32 %v124_v40, %v122_v33  ;;  %v395_v63 = vsel %vm392_vm2, %v393_v61, %v394_v62 }
  0x15   :  { %v130_v45 = vrot.slane %v128_v41, 1  ;;  %v397_v2 = vsel %vm392_vm2, %v394_v62, %v396_v1  ;;  %v399_v4 = vsel %vm392_vm2, %v396_v1, %v398_v3 }
  0x16   :  { %v118_v38 = vor.u32 %v117_v36, %v113_v31 }
  0x17   :  { %1379 = vmatpush3.bf16.msra.mxu0 %v1549_v16  ;;  %1407 = vmatpush3.bf16.msra.mxu1 %v1550_v17  ;;  %v131_v50 = vsel %vm111_vm1, %v126_v48, %v130_v45  ;;  %v134_v53 = vor.u32 %v132_v46, %v130_v45  ;;  %v1580_v16 = vld [vmem:[%s1961_s1 + $0xd0] sm:$0xff]   ;;  %v1581_v17 = vld [vmem:[%s1961_s1 + $0x118] sm:$0xff]  }
  0x18   :  { %1380 = vmatprep.subr.bf16.mxu0 %v1603_v0  ;;  %1408 = vmatprep.subr.bf16.mxu1 %v1603_v0  ;;  %v123_v43 = vsel %vm111_vm1, %v118_v38, %v122_v33 }
  0x19   :  { %v139_v55 = vsel %vm111_vm1, %v134_v53, %v138_v42 }
  0x1b   :  { %1381 = vmatpush3.bf16.msra.mxu0 %v1551_v18  ;;  %1409 = vmatpush3.bf16.msra.mxu1 %v1552_v21  ;;  %v1582_v18 = vld [vmem:[%s1961_s1 + $0xc8] sm:$0xff]   ;;  %v1583_v21 = vld [vmem:[%s1961_s1 + $0x110] sm:$0xff]  }
  0x1c   :  { %1382 = vmatprep.subr.bf16.mxu0 %v1603_v0  ;;  %1410 = vmatprep.subr.bf16.mxu1 %v1603_v0 }
  0x1f   :  { %1383 = vmatpush3.bf16.msra.mxu0 %v1553_v24  ;;  %1411 = vmatpush3.bf16.msra.mxu1 %v1554_v28  ;;  %v1587_v24 = vld [vmem:[%s1961_s1 + $0x100] sm:$0xff]  }
  0x20   :  { %1424 = vmatprep.subr.bf16.mxu0 %v1603_v0  ;;  %1452 = vmatprep.subr.bf16.mxu1 %v1603_v0 }
  0x22   :  { %1413 = vmatmul.mubr.bf16.vlgmr.msra.gmra.mxu1 %v1557_v34  ;;  %1385 = vmatmul.mubr.bf16.vlgmr.msra.gmra.mxu0 %v123_v43 }
  0x23   :  { %1416 = vmatprep.mubr.msk.bf16.mxu1 %vm1605_vm0, %v1603_v0  ;;  %1425 = vmatpush3.bf16.msra.mxu0 %v1558_v39 }
  0x24   :  { %1388 = vmatprep.mubr.msk.bf16.mxu0 %vm1605_vm0, %v1603_v0  ;;  %1426 = vmatprep.subr.bf16.mxu0 %v1603_v0 }
  0x25   :  { %1453 = vmatpush3.bf16.msra.mxu1 %v1573_v7 }
  0x26   :  { %1454 = vmatprep.subr.bf16.mxu1 %v1603_v0 }
  0x27   :  { %1427 = vmatpush3.bf16.msra.mxu0 %v1559_v44 }
  0x28   :  { %1428 = vmatprep.subr.bf16.mxu0 %v1603_v0 }
  0x29   :  { %1455 = vmatpush3.bf16.msra.mxu1 %v1575_v9 }
  0x2a   :  { %1417 = vmatmul.mubr.bf16.gmra.mxu1 %v1562_v47  ;;  %1389 = vmatmul.mubr.bf16.gmra.mxu0 %v131_v50 }
  0x2b   :  { %1420 = vmatprep.mubr.msk.bf16.mxu1 %vm1605_vm0, %v1603_v0  ;;  %1429 = vmatpush3.bf16.msra.mxu0 %v1560_v49 }
  0x2c   :  { %1392 = vmatprep.mubr.msk.bf16.mxu0 %vm1605_vm0, %v1603_v0  ;;  %1430 = vmatprep.subr.bf16.mxu0 %v1603_v0 }
  0x2d   :  { %1456 = vmatprep.subr.bf16.mxu1 %v1603_v0 }
  0x2e   :  { %1457 = vmatpush3.bf16.msra.mxu1 %v1577_v11 }
  0x2f   :  { %1431 = vmatpush3.bf16.msra.mxu0 %v1563_v51  ;;  %1458 = vmatprep.subr.bf16.mxu1 %v1603_v0  ;;  %v1191_v51 = vld [vmem:[%s1963_s2] ss:$0 sm:$0xff] }
  0x30   :  { %1432 = vmatprep.subr.bf16.mxu0 %v1603_v0 }
  0x32   :  { %1421 = vmatmul.mubr.bf16.gmra.mxu1 %v1566_v52  ;;  %1393 = vmatmul.mubr.bf16.gmra.mxu0 %v139_v55 }
  0x33   :  { %1468 = vmatprep.mubr.msk.bf16.mxu1 %vm1605_vm0, %v1603_v0  ;;  %1433 = vmatpush3.bf16.msra.mxu0 %v1564_v54 }
  0x34   :  { %1440 = vmatprep.mubr.msk.bf16.mxu0 %vm1605_vm0, %v1603_v0  ;;  %1434 = vmatprep.subr.bf16.mxu0 %v1603_v0 }
  0x35   :  { %1459 = vmatpush3.bf16.msra.mxu1 %v1579_v15 }
  0x36   :  { %1460 = vmatprep.subr.bf16.mxu1 %v1603_v0 }
  0x37   :  { %1435 = vmatpush3.bf16.msra.mxu0 %v1567_v56 }
  0x38   :  { %1436 = vmatprep.subr.bf16.mxu0 %v1603_v0 }
  0x39   :  { %1461 = vmatpush3.bf16.msra.mxu1 %v1581_v17 }
  0x3a   :  { %1462 = vmatprep.subr.bf16.mxu1 %v1603_v0 }
  0x3b   :  { %1437 = vmatpush3.bf16.msra.mxu0 %v1568_v58 }
  0x3c   :  { %1438 = vmatprep.subr.bf16.mxu0 %v1603_v0 }
  0x3d   :  { %1463 = vmatpush3.bf16.msra.mxu1 %v1583_v21 }
  0x3e   :  { %1464 = vmatprep.subr.bf16.mxu1 %v1603_v0 }
  0x3f   :  { %1439 = vmatpush3.bf16.msra.mxu0 %v1569_v60 }
  0x40   :  { %1480 = vmatprep.subr.bf16.mxu0 %v1603_v0 }
  0x41   :  { %1465 = vmatpush3.bf16.msra.mxu1 %v1586_v23 }
  0x42   :  { %1441 = vmatmul.mubr.bf16.vlgmr.msra.gmra.mxu0 %v395_v63  ;;  %1466 = vmatprep.subr.bf16.mxu1 %v1603_v0 }
  0x43   :  { %1444 = vmatprep.mubr.msk.bf16.mxu0 %vm1605_vm0, %v1603_v0  ;;  %1481 = vmatpush3.bf16.msra.mxu0 %v1571_v5 }
  0x44   :  { %1482 = vmatprep.subr.bf16.mxu0 %v1603_v0 }
  0x45   :  { %1467 = vmatpush3.bf16.msra.mxu1 %v1587_v24 }
  0x46   :  { %1508 = vmatprep.subr.bf16.mxu1 %v1603_v0 }
  0x47   :  { %1483 = vmatpush3.bf16.msra.mxu0 %v1572_v6 }
  0x48   :  { %1484 = vmatprep.subr.bf16.mxu0 %v1603_v0 }
  0x4a   :  { %1445 = vmatmul.mubr.bf16.gmra.mxu0 %v397_v2 }
  0x4b   :  { %1448 = vmatprep.mubr.msk.bf16.mxu0 %vm1605_vm0, %v1603_v0  ;;  %1485 = vmatpush3.bf16.msra.mxu0 %v1574_v8 }
  0x4c   :  { %1486 = vmatprep.subr.bf16.mxu0 %v1603_v0 }
  0x4f   :  { %1487 = vmatpush3.bf16.msra.mxu0 %v1576_v10 }
  0x50   :  { %1488 = vmatprep.subr.bf16.mxu0 %v1603_v0 }
  0x52   :  { %1449 = vmatmul.mubr.bf16.gmra.mxu0 %v399_v4 }
  0x53   :  { %1496 = vmatprep.mubr.msk.bf16.mxu0 %vm1605_vm0, %v1603_v0  ;;  %1489 = vmatpush3.bf16.msra.mxu0 %v1578_v14 }
  0x54   :  { %1490 = vmatprep.subr.bf16.mxu0 %v1603_v0 }
  0x57   :  { %1491 = vmatpush3.bf16.msra.mxu0 %v1580_v16 }
  0x58   :  { %1492 = vmatprep.subr.bf16.mxu0 %v1603_v0 }
  0x5b   :  { %1493 = vmatpush3.bf16.msra.mxu0 %v1582_v18 }
  0x5c   :  { %1494 = vmatprep.subr.bf16.mxu0 %v1603_v0 }
  0x5f   :  { %1495 = vmatpush3.bf16.msra.mxu0 %v1584_v22 }
  0xe2   :  { %v348_v25 = vpop.f32.mrf.mxu1  ;;  %v225_v26 = vpop.f32.mrf.mxu0 }
  0xe3   :  { %v349_v49 = vadd.f32 %v348_v25, %v225_v26 }
  0xe4   :  { %v1414_v27 = vpop.f32.mrf.mxu1  ;;  %v1386_v28 = vpop.f32.mrf.mxu0 }
  0xe6   :  { %v351_v29 = vpop.f32.mrf.mxu1  ;;  %v228_v30 = vpop.f32.mrf.mxu0 }
  0xe7   :  { %v352_v54 = vadd.f32 %v351_v29, %v228_v30 }
  0xe8   :  { %v1415_v31 = vpop.f32.mrf.mxu1  ;;  %v1387_v32 = vpop.f32.mrf.mxu0 }
  0xea   :  { %v356_v33 = vpop.f32.mrf.mxu1  ;;  %v233_v34 = vpop.f32.mrf.mxu0 }
  0xeb   :  { %v357_v60 = vadd.f32 %v356_v33, %v233_v34 }
  0xec   :  { %v1418_v35 = vpop.f32.mrf.mxu1  ;;  %v1390_v36 = vpop.f32.mrf.mxu0 }
  0xee   :  { %v359_v37 = vpop.f32.mrf.mxu1  ;;  %v236_v38 = vpop.f32.mrf.mxu0 }
  0xef   :  { %v360_v4 = vadd.f32 %v359_v37, %v236_v38 }
  0xf0   :  { %v1419_v39 = vpop.f32.mrf.mxu1  ;;  %v1391_v40 = vpop.f32.mrf.mxu0 }
  0xf2   :  { %v364_v41 = vpop.f32.mrf.mxu1  ;;  %v241_v42 = vpop.f32.mrf.mxu0 }
  0xf3   :  { %v365_v21 = vadd.f32 %v364_v41, %v241_v42 }
  0xf4   :  { %v1422_v43 = vpop.f32.mrf.mxu1  ;;  %v1394_v44 = vpop.f32.mrf.mxu0 }
  0xf6   :  { %v367_v45 = vpop.f32.mrf.mxu1  ;;  %v244_v46 = vpop.f32.mrf.mxu0 }
  0xf7   :  { %v368_v30 = vadd.f32 %v367_v45, %v244_v46  ;;  %v629_v46 = vld [vmem:[#allocation2] sm:$0xf] }
  0xf8   :  { %v1423_v47 = vpop.f32.mrf.mxu1  ;;  %v1395_v48 = vpop.f32.mrf.mxu0 }
 0x102   :  { %v485_v50 = vpop.f32.mrf.mxu0 }
 0x103   :  { %v508_v52 = vadd.f32 %v485_v50, %v349_v49 }
 0x104   :  { %v1442_v53 = vpop.f32.mrf.mxu0 }
 0x105   :  { %v519_v55 = vadd.f32 %v1191_v51, %v508_v52 }
 0x106   :  { %v488_v56 = vpop.f32.mrf.mxu0 }
 0x107   :  { %v525_v57 = vmax.f32 %v519_v55, 0.0  ;;  %v509_v58 = vadd.f32 %v488_v56, %v352_v54 }
 0x108   :  { %v1443_v59 = vpop.f32.mrf.mxu0 }
 0x109   :  { %v520_v61 = vadd.f32 %v1191_v51, %v509_v58  ;;  %v1290_v63 = vpack.c.bf16 %v525_v57, %v525_v57 }
 0x10a   :  { %v493_v62 = vpop.f32.mrf.mxu0 }
 0x10b   :  { %v526_v1 = vmax.f32 %v520_v61, 0.0  ;;  %v510_v2 = vadd.f32 %v493_v62, %v357_v60  ;;  %v542_v8 = vshrl.u32 %v1290_v63, 16 }
 0x10c   :  { %v1446_v3 = vpop.f32.mrf.mxu0 }
 0x10d   :  { %v1291_v5 = vpack.c.bf16 %v526_v1, %v526_v1  ;;  %v521_v6 = vadd.f32 %v1191_v51, %v510_v2  ;;  %v1195_v24 = vrot.slane %v542_v8, 11 }
 0x10e   :  { %v496_v7 = vpop.f32.mrf.mxu0 }
 0x10f   :  { %v547_v9 = vshrl.u32 %v1291_v5, 16  ;;  %v527_v10 = vmax.f32 %v521_v6, 0.0  ;;  %v511_v11 = vadd.f32 %v496_v7, %v360_v4  ;;  %v550_v16 = vshll.u32 %v1291_v5, 16 }
 0x110   :  { %v1447_v14 = vpop.f32.mrf.mxu0 }
 0x111   :  { %v549_v15 = vrot.slane %v547_v9, 7  ;;  %v1292_v17 = vpack.c.bf16 %v527_v10, %v527_v10  ;;  %v522_v18 = vadd.f32 %v1191_v51, %v511_v11  ;;  %v1591_v9 = vld [vmem:[%s1961_s1 + $0x178] sm:$0xff]   ;;  %v1592_v11 = vld [vmem:[%s1961_s1 + $0x170] sm:$0xff]  }
 0x112   :  { %v501_v23 = vpop.f32.mrf.mxu0 }
 0x113   :  { %v552_v25 = vor.u32 %v550_v16, %v549_v15  ;;  %v556_v26 = vshrl.u32 %v1292_v17, 16  ;;  %v567_v27 = vmax.f32 %v522_v18, 0.0  ;;  %v512_v28 = vadd.f32 %v501_v23, %v365_v21  ;;  %v1596_v23 = vld [vmem:[%s1961_s1 + $0x160] sm:$0xff]  }
 0x114   :  { %v1450_v29 = vpop.f32.mrf.mxu0  ;;  %v559_v33 = vshll.u32 %v1292_v17, 16  ;;  %v554_v36 = vrot.slane %v549_v15, 4  ;;  %v1594_v15 = vld [vmem:[%s1961_s1 + $0x168] sm:$0xff]  }
 0x115   :  { %v553_v31 = vsel %vm1862_vm5, %v1195_v24, %v552_v25  ;;  %v558_v32 = vrot.slane %v556_v26, 7  ;;  %v523_v34 = vadd.f32 %v1191_v51, %v512_v28  ;;  %v1293_v39 = vpack.c.bf16 %v567_v27, %v567_v27  ;;  %v1598_v24 = vld [vmem:[#allocation2 + $0x18] ss:$0 sps:$4 sm:$0x11]  }
 0x116   :  { %565 = vst [vmem:[#allocation2 + $0x4] sm:$0xf] %v553_v31  ;;  %v504_v35 = vpop.f32.mrf.mxu0  ;;  %v695_v26 = vshll.u32 %v1598_v24, 16  ;;  %v1597_v27 = vld [vmem:[%s1961_s1 + $0x158] sm:$0xff]   ;;  %v1599_v31 = vld [vmem:[%s1961_s1 + $0x150] sm:$0xff]  }
 0x117   :  { %v561_v37 = vor.u32 %v559_v33, %v558_v32  ;;  %v513_v38 = vadd.f32 %v504_v35, %v368_v30  ;;  %v568_v40 = vmax.f32 %v523_v34, 0.0  ;;  %v581_v47 = vshrl.u32 %v1293_v39, 16  ;;  %v1600_v33 = vld [vmem:[%s1961_s1 + $0x148] sm:$0xff]   ;;  %v930_v34 = vld [vmem:[#allocation2] sm:$0xe] }
 0x118   :  { %v1451_v41 = vpop.f32.mrf.mxu0  ;;  %v697_v30 = vrot.slane %v695_v26, 1  ;;  %v1601_v35 = vld [vmem:[%s1961_s1 + $0x140] sm:$0xff]  }
 0x119   :  { %v562_v42 = vsel %vm1862_vm5, %v554_v36, %v561_v37  ;;  %v524_v43 = vadd.f32 %v1191_v51, %v513_v38  ;;  %v1294_v44 = vpack.c.bf16 %v568_v40, %v568_v40  ;;  %v1199_v57 = vrot.slane %v581_v47, 11 }
 0x11a   :  { %566 = vst [vmem:[#allocation2 + $0x8] sm:$0xf] %v562_v42  ;;  %v956_v42 = vrot.slane %v1598_v24, 1 }
 0x11b   :  { %v569_v45 = vmax.f32 %v524_v43, 0.0  ;;  %v586_v48 = vshrl.u32 %v1294_v44, 16  ;;  %v589_v54 = vshll.u32 %v1294_v44, 16 }
 0x11d   :  { %v1295_v49 = vpack.c.bf16 %v569_v45, %v569_v45  ;;  %v1585_v50 = vld [vmem:[#allocation2] sm:$0xff]   ;;  %v588_v53 = vrot.slane %v586_v48, 7 }
 0x11e   :  { %v1870_v52 = vld [vmem:[#allocation2 + $0x4] sm:$0xf]  ;;  %1497 = vmatmul.mubr.bf16.vlgmr.msra.gmra.mxu0 %v1585_v50 }
 0x11f   :  { %v1232_v55 = vcombine.low %v629_v46, %v1870_v52  ;;  %v595_v56 = vshrl.u32 %v1295_v49, 16  ;;  %v591_v58 = vor.u32 %v589_v54, %v588_v53  ;;  %1500 = vmatprep.mubr.msk.bf16.mxu0 %vm1605_vm0, %v1603_v0  ;;  %v598_v60 = vshll.u32 %v1295_v49, 16 }
 0x120   :  { %v593_v2 = vrot.slane %v588_v53, 4  ;;  %v1271_v36 = vcombine.low %v930_v34, %v1870_v52 }
 0x121   :  { %v674_v51 = vshll.u32 %v1232_v55, 16  ;;  %v597_v59 = vrot.slane %v595_v56, 7  ;;  %v592_v61 = vsel %vm1862_vm5, %v1199_v57, %v591_v58  ;;  %v1877_v62 = vld [vmem:[#allocation2 + $0x8] sm:$0xff]   ;;  %v672_v63 = vshrl.u32 %v1232_v55, 16 }
 0x122   :  { %604 = vst [vmem:[#allocation2 + $0x10] sm:$0xf] %v592_v61  ;;  %v679_v5 = vshll.u32 %v1877_v62, 16  ;;  %v1588_v7 = vld [vmem:[#allocation2 + $0x8] sm:$0xff]   ;;  %v683_v17 = vshrl.u32 %v1877_v62, 16  ;;  %v952_v37 = vrot.slane %v1877_v62, 1 }
 0x123   :  { %v676_v1 = vrot.slane %v674_v51, 1  ;;  %v600_v3 = vor.u32 %v598_v60, %v597_v59  ;;  %v951_v38 = vrot.slane %v1271_v36, 1 }
 0x124   :  { %v681_v8 = vrot.slane %v679_v5, 1 }
 0x125   :  { %v677_v4 = vor.u32 %v676_v1, %v672_v63  ;;  %v601_v6 = vsel %vm1862_vm5, %v593_v2, %v600_v3  ;;  %v953_v39 = vsel %vm392_vm2, %v951_v38, %v952_v37 }
 0x126   :  { %605 = vst [vmem:[#allocation2 + $0x14] sm:$0xf] %v601_v6  ;;  %1501 = vmatmul.mubr.bf16.gmra.mxu0 %v1588_v7  ;;  %v685_v21 = vor.u32 %v683_v17, %v681_v8  ;;  %v1280_v6 = vld [vmem:[%s1963_s2 + $0x1] ss:$0 sm:$0xff] }
 0x127   :  { %v682_v10 = vsel %vm111_vm1, %v677_v4, %v681_v8  ;;  %1504 = vmatprep.mubr.msk.bf16.mxu0 %vm1605_vm0, %v1603_v0  ;;  %v1088_v8 = vrot.slane %v1673_v12, 1 }
 0x128   :  { %1469 = vmatmul.mubr.bf16.vlgmr.msra.gmra.mxu1 %v682_v10  ;;  %v1089_v10 = vrot.slane %v1678_v13, 1 }
 0x129   :  { %1509 = vmatpush3.bf16.msra.mxu1 %v1591_v9  ;;  %1472 = vmatprep.mubr.msk.bf16.mxu1 %vm1605_vm0, %v1603_v0 }
 0x12a   :  { %1510 = vmatprep.subr.bf16.mxu1 %v1603_v0 }
 0x12d   :  { %v1593_v14 = vld [vmem:[#allocation2 + $0x10] sm:$0xff]   ;;  %1511 = vmatpush3.bf16.msra.mxu1 %v1592_v11 }
 0x12e   :  { %v1595_v16 = vld [vmem:[#allocation2 + $0x10] sm:$0xff]   ;;  %1505 = vmatmul.mubr.bf16.gmra.mxu0 %v1593_v14  ;;  %1512 = vmatprep.subr.bf16.mxu1 %v1603_v0 }
 0x12f   :  { %v687_v18 = vshll.u32 %v1595_v16, 16  ;;  %v691_v28 = vshrl.u32 %v1595_v16, 16  ;;  %v954_v40 = vrot.slane %v1595_v16, 1 }
 0x131   :  { %1513 = vmatpush3.bf16.msra.mxu1 %v1594_v15  ;;  %v689_v22 = vrot.slane %v687_v18, 1  ;;  %v955_v41 = vsel %vm392_vm2, %v952_v37, %v954_v40  ;;  %v957_v43 = vsel %vm392_vm2, %v954_v40, %v956_v42  ;;  %v1090_v18 = vsel %vm392_vm2, %v1088_v8, %v1089_v10 }
 0x132   :  { %1514 = vmatprep.subr.bf16.mxu1 %v1603_v0 }
 0x133   :  { %v690_v25 = vsel %vm111_vm1, %v685_v21, %v689_v22  ;;  %v693_v29 = vor.u32 %v691_v28, %v689_v22 }
 0x134   :  { %1473 = vmatmul.mubr.bf16.gmra.mxu1 %v690_v25 }
 0x135   :  { %1515 = vmatpush3.bf16.msra.mxu1 %v1596_v23  ;;  %1476 = vmatprep.mubr.msk.bf16.mxu1 %vm1605_vm0, %v1603_v0  ;;  %v698_v32 = vsel %vm111_vm1, %v693_v29, %v697_v30 }
 0x136   :  { %1516 = vmatprep.subr.bf16.mxu1 %v1603_v0 }
 0x139   :  { %1517 = vmatpush3.bf16.msra.mxu1 %v1597_v27 }
 0x13a   :  { %1518 = vmatprep.subr.bf16.mxu1 %v1603_v0 }
 0x13c   :  { %1477 = vmatmul.mubr.bf16.gmra.mxu1 %v698_v32 }
 0x13d   :  { %1519 = vmatpush3.bf16.msra.mxu1 %v1599_v31  ;;  %1524 = vmatprep.mubr.msk.bf16.mxu1 %vm1605_vm0, %v1603_v0  ;;  %v1104_v31 = vrot.slane %v1698_v19, 1 }
 0x13e   :  { %1520 = vmatprep.subr.bf16.mxu1 %v1603_v0 }
 0x141   :  { %1521 = vmatpush3.bf16.msra.mxu1 %v1600_v33  ;;  %v1105_v33 = vrot.slane %v1703_v20, 1 }
 0x142   :  { %1522 = vmatprep.subr.bf16.mxu1 %v1603_v0 }
 0x145   :  { %1523 = vmatpush3.bf16.msra.mxu1 %v1601_v35 }
 0x148   :  { %1525 = vmatmul.mubr.bf16.vlgmr.msra.gmra.mxu1 %v953_v39  ;;  %v1106_v39 = vsel %vm392_vm2, %v1104_v31, %v1105_v33 }
 0x149   :  { %1528 = vmatprep.mubr.msk.bf16.mxu1 %vm1605_vm0, %v1603_v0 }
 0x150   :  { %1529 = vmatmul.mubr.bf16.gmra.mxu1 %v955_v41 }
 0x151   :  { %1532 = vmatprep.mubr.msk.bf16.mxu1 %vm1605_vm0, %v1603_v0 }
 0x158   :  { %1533 = vmatmul.mubr.bf16.gmra.mxu1 %v957_v43 }
 0x1de   :  { %v907_v44 = vpop.f32.mrf.mxu0 }
 0x1e0   :  { %v1498_v45 = vpop.f32.mrf.mxu0 }
 0x1e2   :  { %v910_v46 = vpop.f32.mrf.mxu0 }
 0x1e4   :  { %v1499_v47 = vpop.f32.mrf.mxu0 }
 0x1e6   :  { %v915_v48 = vpop.f32.mrf.mxu0 }
 0x1e8   :  { %v784_v49 = vpop.f32.mrf.mxu1  ;;  %v1502_v50 = vpop.f32.mrf.mxu0 }
 0x1e9   :  { %v908_v4 = vadd.f32 %v907_v44, %v784_v49 }
 0x1ea   :  { %v1470_v52 = vpop.f32.mrf.mxu1  ;;  %v918_v53 = vpop.f32.mrf.mxu0 }
 0x1ec   :  { %v787_v54 = vpop.f32.mrf.mxu1  ;;  %v1503_v55 = vpop.f32.mrf.mxu0 }
 0x1ed   :  { %v911_v11 = vadd.f32 %v910_v46, %v787_v54 }
 0x1ee   :  { %v1471_v56 = vpop.f32.mrf.mxu1  ;;  %v923_v57 = vpop.f32.mrf.mxu0 }
 0x1f0   :  { %v1506_v58 = vpop.f32.mrf.mxu0 }
 0x1f2   :  { %v926_v51 = vpop.f32.mrf.mxu0 }
 0x1f4   :  { %v792_v0 = vpop.f32.mrf.mxu1  ;;  %v1507_v59 = vpop.f32.mrf.mxu0 }
 0x1f5   :  { %v916_v22 = vadd.f32 %v915_v48, %v792_v0 }
 0x1f6   :  { %v1474_v60 = vpop.f32.mrf.mxu1 }
 0x1f8   :  { %v795_v61 = vpop.f32.mrf.mxu1 }
 0x1f9   :  { %v919_v27 = vadd.f32 %v918_v53, %v795_v61 }
 0x1fa   :  { %v1475_v62 = vpop.f32.mrf.mxu1 }
 0x1fc   :  { %v800_v63 = vpop.f32.mrf.mxu1 }
 0x1fd   :  { %v924_v34 = vadd.f32 %v923_v57, %v800_v63 }
 0x1fe   :  { %v1478_v1 = vpop.f32.mrf.mxu1 }
 0x200   :  { %v803_v2 = vpop.f32.mrf.mxu1 }
 0x201   :  { %v927_v41 = vadd.f32 %v926_v51, %v803_v2 }
 0x202   :  { %v1479_v3 = vpop.f32.mrf.mxu1 }
 0x208   :  { %v1043_v5 = vpop.f32.mrf.mxu1 }
 0x209   :  { %v1066_v7 = vadd.f32 %v1043_v5, %v908_v4 }
 0x20a   :  { %v1526_v9 = vpop.f32.mrf.mxu1 }
 0x20b   :  { %v1077_v14 = vadd.f32 %v1280_v6, %v1066_v7 }
 0x20c   :  { %v1046_v15 = vpop.f32.mrf.mxu1 }
 0x20d   :  { %v1094_v16 = vadd.f32 %v1088_v8, %v1077_v14  ;;  %v1067_v17 = vadd.f32 %v1046_v15, %v911_v11 }
 0x20e   :  { %v1527_v21 = vpop.f32.mrf.mxu1 }
 0x20f   :  { %1097 = vst [vmem:[%s1964_s3 - $0x7] sm:$0x80] %v1094_v16  ;;  %v1078_v23 = vadd.f32 %v1280_v6, %v1067_v17 }
 0x210   :  { %v1051_v24 = vpop.f32.mrf.mxu1 }
 0x211   :  { %v1095_v25 = vadd.f32 %v1090_v18, %v1078_v23  ;;  %v1068_v12 = vadd.f32 %v1051_v24, %v916_v22 }
 0x212   :  { %v1530_v26 = vpop.f32.mrf.mxu1 }
 0x213   :  { %1098 = vst [vmem:[%s1964_s3 + $0x1] sm:$0xff] %v1095_v25  ;;  %v1079_v13 = vadd.f32 %v1280_v6, %v1068_v12 }
 0x214   :  { %v1054_v28 = vpop.f32.mrf.mxu1 }
 0x215   :  { %v1096_v29 = vadd.f32 %v1089_v10, %v1079_v13  ;;  %v1069_v30 = vadd.f32 %v1054_v28, %v919_v27 }
 0x216   :  { %v1531_v32 = vpop.f32.mrf.mxu1 }
 0x217   :  { %1099 = vst [vmem:[%s1964_s3 + $0x9] sm:$0x7f] %v1096_v29  ;;  %v1080_v35 = vadd.f32 %v1280_v6, %v1069_v30 }
 0x218   :  { %v1059_v36 = vpop.f32.mrf.mxu1 }
 0x219   :  { %v1110_v37 = vadd.f32 %v1104_v31, %v1080_v35  ;;  %v1070_v38 = vadd.f32 %v1059_v36, %v924_v34 }
 0x21a   :  { %v1534_v40 = vpop.f32.mrf.mxu1 }
 0x21b   :  { %1283 = vst [vmem:[%s1964_s3 + $0x9] sm:$0x80] %v1110_v37  ;;  %v1081_v19 = vadd.f32 %v1280_v6, %v1070_v38 }
 0x21c   :  { %v1062_v42 = vpop.f32.mrf.mxu1 }
 0x21d   :  { %v1111_v20 = vadd.f32 %v1106_v39, %v1081_v19  ;;  %v1071_v43 = vadd.f32 %v1062_v42, %v927_v41 }
 0x21e   :  { %v1535_v44 = vpop.f32.mrf.mxu1 }
 0x21f   :  { %1284 = vst [vmem:[%s1964_s3 + $0x11] sm:$0xff] %v1111_v20  ;;  %v1082_v45 = vadd.f32 %v1280_v6, %v1071_v43 }
 0x221   :  { %v1112_v46 = vadd.f32 %v1105_v33, %v1082_v45 }
 0x223   :  { %1285 = vst [vmem:[%s1964_s3 + $0x19] sm:$0x7f] %v1112_v46 }

</bundles_post_ra>
